<compile_context>
chip_gen: v6e
topology: v6e:2x2x1
jax: 0.10.0
libtpu: 0.0.40
codegen_flags: <defaults>
</compile_context>

<pallas_src>
import functools
import math

import jax
import jax.numpy as jnp
from jax.experimental import pallas as pl
from jax.experimental.pallas import tpu as pltpu

ALPHA = 0.2  # LeakyReLU negative slope


def _leaky_relu(x, alpha):
    return jnp.where(x > 0, x, alpha * x)


def _round_up(n, m):
    return ((n + m - 1) // m) * m


def _choose_tiling(batch, block_b):
    """Pick (tile_rows, padded_rows) for the batch axis."""
    b = max(int(batch), 1)
    if b <= 256:
        # Tiny batch: pad only to the f32 sublane multiple and run one grid step.
        # (Padding B=4 up to 256 would be ~64x wasted MXU work / h2 writeback.)
        tb = _round_up(b, 8)
        return tb, tb
    b_pad = _round_up(b, 256)            # 256-row granularity bounds padding waste
    n_min = 2 if b_pad >= 512 else 1     # >=2 tiles so both v7x TensorCores get work
    tb = 256
    for cand in range(256, min(block_b, b_pad) + 1, 256):
        if b_pad % cand == 0 and b_pad // cand >= n_min:
            tb = cand
    return tb, b_pad


def discriminator_central_kernel(
    x_ref,
    w1_ref, b1_ref,
    w2_ref, b2_ref,
    w3_ref, b3_ref,
    w4_ref, b4_ref,   # w4_ref is the [1, 64] row form of the final weight
    out_ref, h2_ref,
):
    mxu_dtype = w1_ref.dtype

    # layer_1: Linear -> LeakyReLU (-> Dropout, identity at inference).
    # x is cast to the MXU dtype here (VPU op hidden under the input DMA).
    h1 = jnp.dot(x_ref[...].astype(mxu_dtype), w1_ref[...],
                 preferred_element_type=jnp.float32) + b1_ref[...]
    h1 = _leaky_relu(h1, ALPHA)

    # layer_2: Linear -> LeakyReLU (-> Dropout)
    h2 = jnp.dot(h1.astype(mxu_dtype), w2_ref[...],
                 preferred_element_type=jnp.float32) + b2_ref[...]
    h2 = _leaky_relu(h2, ALPHA)

    # layer_3 (first half): Linear -> LeakyReLU (-> Dropout)
    h3 = jnp.dot(h2.astype(mxu_dtype), w3_ref[...],
                 preferred_element_type=jnp.float32) + b3_ref[...]
    h3 = _leaky_relu(h3, ALPHA)

    # layer_3 (second half): Linear(64, 1) -> Sigmoid, computed as the transposed
    # matmul (1,64) x (tb,64)^T -> (1, tb) so the result is already lane-major and
    # the output store is a dense 128-lane store (no masked lane-width-1 stores).
    logits = jax.lax.dot_general(
        w4_ref[...], h3.astype(mxu_dtype),
        dimension_numbers=(((1,), (1,)), ((), ())),
        preferred_element_type=jnp.float32,
    )  # (1, tb)
    probs = jax.nn.sigmoid(logits + b4_ref[...])

    h2_ref[...] = h2.astype(h2_ref.dtype)
    out_ref[...] = probs.reshape(out_ref.shape).astype(out_ref.dtype)


@functools.partial(jax.jit, static_argnames=("block_b", "use_bf16", "h2_dtype"))
def discriminator_central(x, params, *, block_b=2048, use_bf16=True,
                          h2_dtype=jnp.bfloat16):
    """x: [B, n_samples*n_groups] float32. Returns (output [B,1] f32, output_2 [B,128])."""
    w1, b1, w2, b2, w3, b3, w4, b4 = params
    B, F = x.shape

    tb, b_pad = _choose_tiling(B, block_b)
    if b_pad != B:
        x = jnp.pad(x, ((0, b_pad - B), (0, 0)))
    n_blocks = b_pad // tb

    # bf16 MXU operands; accumulation (preferred_element_type) and all elementwise
    # math (bias, LeakyReLU, sigmoid) stay f32.  Weights are tiny -> cast in the
    # wrapper; x (the large stream) is cast inside the kernel instead.
    mxu_dtype = jnp.bfloat16 if use_bf16 else jnp.float32
    w1c = w1.astype(mxu_dtype)
    w2c = w2.astype(mxu_dtype)
    w3c = w3.astype(mxu_dtype)
    w4c = w4.reshape(1, 64).astype(mxu_dtype)
    b4c = b4.reshape(1, 1).astype(jnp.float32)

    def batch_spec(cols):
        return pl.BlockSpec((tb, cols), lambda i: (i, 0))

    def resident_spec(shape):
        # Constant block index -> fetched once, stays VMEM-resident across the grid.
        return pl.BlockSpec(shape, lambda i: (0,) * len(shape))

    flops = 2 * b_pad * (F * 256 + 256 * 128 + 128 * 64 + 64)
    weight_bytes = sum(
        int(a.size) * a.dtype.itemsize
        for a in (w1c, b1, w2c, b2, w3c, b3, w4c, b4c)
    )
    bytes_accessed = (
        int(x.size) * x.dtype.itemsize                       # x in its incoming dtype
        + weight_bytes
        + b_pad * 4                                          # out (f32)
        + b_pad * 128 * jnp.dtype(h2_dtype).itemsize         # h2
    )
    cost = pl.CostEstimate(
        flops=flops,
        transcendentals=2 * b_pad,          # sigmoid ~ exp + reciprocal per row
        bytes_accessed=bytes_accessed,
    )

    out3, h2 = pl.pallas_call(
        discriminator_central_kernel,
        grid=(n_blocks,),
        in_specs=[
            batch_spec(F),
            resident_spec(w1c.shape), resident_spec(b1.shape),
            resident_spec(w2c.shape), resident_spec(b2.shape),
            resident_spec(w3c.shape), resident_spec(b3.shape),
            resident_spec(w4c.shape), resident_spec(b4c.shape),
        ],
        out_specs=[
            pl.BlockSpec((1, 1, tb), lambda i: (i, 0, 0)),   # lane-dense out row
            batch_spec(128),                                 # h2
        ],
        out_shape=[
            jax.ShapeDtypeStruct((n_blocks, 1, tb), jnp.float32),
            jax.ShapeDtypeStruct((b_pad, 128), h2_dtype),
        ],
        compiler_params=pltpu.CompilerParams(
            dimension_semantics=("parallel",),   # megacore split on v7x
        ),
        cost_estimate=cost,
    )(x, w1c, b1, w2c, b2, w3c, b3, w4c, b4c)

    out = out3.reshape(b_pad, 1)[:B]
    return out, h2[:B]


def init_params(key, in_features):
    """Deterministic init mirroring nn.Linear default (U(-1/sqrt(fan_in), 1/sqrt(fan_in)))."""
    dims = [(in_features, 256), (256, 128), (128, 64), (64, 1)]
    params = []
    for (fin, fout) in dims:
        key, kw, kb = jax.random.split(key, 3)
        bound = 1.0 / math.sqrt(fin)
        w = jax.random.uniform(kw, (fin, fout), jnp.float32, -bound, bound)
        b = jax.random.uniform(kb, (1, fout), jnp.float32, -bound, bound)
        params += [w, b]
    return tuple(params)


def reference_forward(x, params, mxu_dtype=jnp.float32):
    """Pure-JAX reference. mxu_dtype=bfloat16 mirrors the kernel's MXU input casts."""
    w1, b1, w2, b2, w3, b3, w4, b4 = params

    def mm(a, w):
        return jnp.dot(a.astype(mxu_dtype), w.astype(mxu_dtype),
                       preferred_element_type=jnp.float32)

    h1 = _leaky_relu(mm(x, w1) + b1, ALPHA)
    h2 = _leaky_relu(mm(h1, w2) + b2, ALPHA)
    h3 = _leaky_relu(mm(h2, w3) + b3, ALPHA)
    out = jax.nn.sigmoid(mm(h3, w4) + b4)
    return out, h2


if __name__ == "__main__":
    n_samples = 8
    n_groups = 4
    in_features = n_samples * n_groups  # 32

    key = jax.random.PRNGKey(0)
    key, kx = jax.random.split(key)
    params = init_params(key, in_features)

    # --- tiny batch (the CosciGAN use case): single small tile, no 256-row padding ---
    batch = 4
    x = jax.random.normal(kx, (batch, in_features), jnp.float32)

    out, h2 = discriminator_central(x, params)   # bf16 MXU inputs, bf16 h2 output
    out = jax.block_until_ready(out)
    h2 = jax.block_until_ready(h2)
    assert out.shape == (batch, 1) and out.dtype == jnp.float32
    assert h2.shape == (batch, 128) and h2.dtype == jnp.bfloat16

    # Check against a reference using the same bf16 MXU-input casts.
    ref_out, ref_h2 = reference_forward(x, params, mxu_dtype=jnp.bfloat16)
    assert jnp.allclose(out, ref_out, atol=5e-3, rtol=5e-3)
    assert jnp.allclose(h2.astype(jnp.float32), ref_h2, atol=2e-2, rtol=2e-2)

    # Looser sanity check against the full-f32 (PyTorch-equivalent) forward.
    f32_out, f32_h2 = reference_forward(x, params, mxu_dtype=jnp.float32)
    assert jnp.allclose(out, f32_out, atol=5e-2, rtol=5e-2)
    assert jnp.allclose(h2.astype(jnp.float32), f32_h2, atol=5e-2, rtol=5e-2)

    # Strict-parity path: f32 MXU inputs, f32 h2 (tolerance covers MXU pass/order diffs).
    out32, h232 = discriminator_central(x, params, use_bf16=False,
                                        h2_dtype=jnp.float32)
    out32 = jax.block_until_ready(out32)
    assert out32.dtype == jnp.float32 and h232.dtype == jnp.float32
    assert jnp.allclose(out32, f32_out, atol=1e-2, rtol=1e-2)
    assert jnp.allclose(h232, f32_h2, atol=1e-2, rtol=1e-2)

    # --- larger batch: exercises the multi-tile grid, padding, and trimming ---
    batch2 = 384
    x2 = jax.random.normal(jax.random.PRNGKey(1), (batch2, in_features), jnp.float32)
    out2, h22 = discriminator_central(x2, params)
    out2 = jax.block_until_ready(out2)
    h22 = jax.block_until_ready(h22)
    assert out2.shape == (batch2, 1) and h22.shape == (batch2, 128)

    ref2_out, ref2_h2 = reference_forward(x2, params, mxu_dtype=jnp.bfloat16)
    assert jnp.allclose(out2, ref2_out, atol=1e-2, rtol=1e-2)
    assert jnp.allclose(h22.astype(jnp.float32), ref2_h2, atol=2e-2, rtol=2e-2)

    print("KERNEL_OK")
</pallas_src>

<mosaic_0001>
module attributes {stable_mosaic.version = 11 : i64} {
  func.func @discriminator_central_kernel(%arg0: i32, %arg1: memref<8x32xf32, #tpu.memory_space<vmem>>, %arg2: memref<32x256xbf16, #tpu.memory_space<vmem>>, %arg3: memref<1x256xf32, #tpu.memory_space<vmem>>, %arg4: memref<256x128xbf16, #tpu.memory_space<vmem>>, %arg5: memref<1x128xf32, #tpu.memory_space<vmem>>, %arg6: memref<128x64xbf16, #tpu.memory_space<vmem>>, %arg7: memref<1x64xf32, #tpu.memory_space<vmem>>, %arg8: memref<1x64xbf16, #tpu.memory_space<vmem>>, %arg9: memref<1x1xf32, #tpu.memory_space<vmem>>, %arg10: memref<1x1x8xf32, #tpu.memory_space<vmem>>, %arg11: memref<8x128xbf16, #tpu.memory_space<vmem>>) attributes {dimension_semantics = [#tpu.dimension_semantics<parallel>], iteration_bounds = array<i64: 1>, scalar_prefetch = 0 : i64, scratch_operands = 0 : i64, tpu.core_type = #tpu.core_type<tc>, window_params = [{transform_indices = @transform_0, window_bounds = array<i64: 8, 32>}, {pipeline_mode = #tpu.pipeline_mode<synchronous>, transform_indices = @transform_1, window_bounds = array<i64: 32, 256>}, {pipeline_mode = #tpu.pipeline_mode<synchronous>, transform_indices = @transform_2, window_bounds = array<i64: 1, 256>}, {pipeline_mode = #tpu.pipeline_mode<synchronous>, transform_indices = @transform_3, window_bounds = array<i64: 256, 128>}, {pipeline_mode = #tpu.pipeline_mode<synchronous>, transform_indices = @transform_4, window_bounds = array<i64: 1, 128>}, {pipeline_mode = #tpu.pipeline_mode<synchronous>, transform_indices = @transform_5, window_bounds = array<i64: 128, 64>}, {pipeline_mode = #tpu.pipeline_mode<synchronous>, transform_indices = @transform_6, window_bounds = array<i64: 1, 64>}, {pipeline_mode = #tpu.pipeline_mode<synchronous>, transform_indices = @transform_7, window_bounds = array<i64: 1, 64>}, {pipeline_mode = #tpu.pipeline_mode<synchronous>, transform_indices = @transform_8, window_bounds = array<i64: 1, 1>}, {transform_indices = @transform_9, window_bounds = array<i64: 1, 1, 8>}, {transform_indices = @transform_10, window_bounds = array<i64: 8, 128>}]} {
    %c0 = arith.constant 0 : index
    %c0_0 = arith.constant 0 : index
    %0 = vector.load %arg1[%c0, %c0_0] : memref<8x32xf32, #tpu.memory_space<vmem>>, vector<8x32xf32>
    %1 = arith.truncf %0 : vector<8x32xf32> to vector<8x32xbf16>
    %c0_1 = arith.constant 0 : index
    %c0_2 = arith.constant 0 : index
    %2 = vector.load %arg2[%c0_1, %c0_2] : memref<32x256xbf16, #tpu.memory_space<vmem>>, vector<32x256xbf16>
    %cst = arith.constant dense<0.000000e+00> : vector<8x256xf32>
    %3 = tpu.matmul %1, %2, %cst {dimension_numbers = #tpu.dot_dimension_numbers<[1], [0], [0], [1], [0, 0, 1, 1], [], []>} : vector<8x32xbf16>, vector<32x256xbf16>, vector<8x256xf32> -> vector<8x256xf32>
    %c0_3 = arith.constant 0 : index
    %c0_4 = arith.constant 0 : index
    %4 = vector.load %arg3[%c0_3, %c0_4] : memref<1x256xf32, #tpu.memory_space<vmem>>, vector<1x256xf32>
    %5 = vector.broadcast %4 : vector<1x256xf32> to vector<8x256xf32>
    %6 = arith.addf %3, %5 : vector<8x256xf32>
    %cst_5 = arith.constant 0.000000e+00 : f32
    %7 = vector.broadcast %cst_5 : f32 to vector<8x256xf32>
    %8 = arith.cmpf ogt, %6, %7 : vector<8x256xf32>
    %cst_6 = arith.constant 2.000000e-01 : f32
    %9 = vector.broadcast %cst_6 : f32 to vector<8x256xf32>
    %10 = arith.mulf %9, %6 : vector<8x256xf32>
    %11 = arith.select %8, %6, %10 : vector<8x256xi1>, vector<8x256xf32>
    %12 = arith.truncf %11 : vector<8x256xf32> to vector<8x256xbf16>
    %c0_7 = arith.constant 0 : index
    %c0_8 = arith.constant 0 : index
    %13 = vector.load %arg4[%c0_7, %c0_8] : memref<256x128xbf16, #tpu.memory_space<vmem>>, vector<256x128xbf16>
    %cst_9 = arith.constant dense<0.000000e+00> : vector<8x128xf32>
    %14 = tpu.matmul %12, %13, %cst_9 {dimension_numbers = #tpu.dot_dimension_numbers<[1], [0], [0], [1], [0, 0, 1, 1], [], []>} : vector<8x256xbf16>, vector<256x128xbf16>, vector<8x128xf32> -> vector<8x128xf32>
    %c0_10 = arith.constant 0 : index
    %c0_11 = arith.constant 0 : index
    %15 = vector.load %arg5[%c0_10, %c0_11] : memref<1x128xf32, #tpu.memory_space<vmem>>, vector<1x128xf32>
    %16 = vector.broadcast %15 : vector<1x128xf32> to vector<8x128xf32>
    %17 = arith.addf %14, %16 : vector<8x128xf32>
    %cst_12 = arith.constant 0.000000e+00 : f32
    %18 = vector.broadcast %cst_12 : f32 to vector<8x128xf32>
    %19 = arith.cmpf ogt, %17, %18 : vector<8x128xf32>
    %cst_13 = arith.constant 2.000000e-01 : f32
    %20 = vector.broadcast %cst_13 : f32 to vector<8x128xf32>
    %21 = arith.mulf %20, %17 : vector<8x128xf32>
    %22 = arith.select %19, %17, %21 : vector<8x128xi1>, vector<8x128xf32>
    %23 = arith.truncf %22 : vector<8x128xf32> to vector<8x128xbf16>
    %c0_14 = arith.constant 0 : index
    %c0_15 = arith.constant 0 : index
    %24 = vector.load %arg6[%c0_14, %c0_15] : memref<128x64xbf16, #tpu.memory_space<vmem>>, vector<128x64xbf16>
    %cst_16 = arith.constant dense<0.000000e+00> : vector<8x64xf32>
    %25 = tpu.matmul %23, %24, %cst_16 {dimension_numbers = #tpu.dot_dimension_numbers<[1], [0], [0], [1], [0, 0, 1, 1], [], []>} : vector<8x128xbf16>, vector<128x64xbf16>, vector<8x64xf32> -> vector<8x64xf32>
    %c0_17 = arith.constant 0 : index
    %c0_18 = arith.constant 0 : index
    %26 = vector.load %arg7[%c0_17, %c0_18] : memref<1x64xf32, #tpu.memory_space<vmem>>, vector<1x64xf32>
    %27 = vector.broadcast %26 : vector<1x64xf32> to vector<8x64xf32>
    %28 = arith.addf %25, %27 : vector<8x64xf32>
    %cst_19 = arith.constant 0.000000e+00 : f32
    %29 = vector.broadcast %cst_19 : f32 to vector<8x64xf32>
    %30 = arith.cmpf ogt, %28, %29 : vector<8x64xf32>
    %cst_20 = arith.constant 2.000000e-01 : f32
    %31 = vector.broadcast %cst_20 : f32 to vector<8x64xf32>
    %32 = arith.mulf %31, %28 : vector<8x64xf32>
    %33 = arith.select %30, %28, %32 : vector<8x64xi1>, vector<8x64xf32>
    %c0_21 = arith.constant 0 : index
    %c0_22 = arith.constant 0 : index
    %34 = vector.load %arg8[%c0_21, %c0_22] : memref<1x64xbf16, #tpu.memory_space<vmem>>, vector<1x64xbf16>
    %35 = arith.truncf %33 : vector<8x64xf32> to vector<8x64xbf16>
    %cst_23 = arith.constant dense<0.000000e+00> : vector<1x8xf32>
    %36 = tpu.matmul %34, %35, %cst_23 {dimension_numbers = #tpu.dot_dimension_numbers<[1], [1], [0], [0], [0, 0, 1, 0], [], []>} : vector<1x64xbf16>, vector<8x64xbf16>, vector<1x8xf32> -> vector<1x8xf32>
    %c0_24 = arith.constant 0 : index
    %c0_25 = arith.constant 0 : index
    %37 = vector.load %arg9[%c0_24, %c0_25] : memref<1x1xf32, #tpu.memory_space<vmem>>, vector<1x1xf32>
    %38 = vector.broadcast %37 : vector<1x1xf32> to vector<1x8xf32>
    %39 = arith.addf %36, %38 : vector<1x8xf32>
    %40 = arith.negf %39 : vector<1x8xf32>
    %41 = math.exp %40 : vector<1x8xf32>
    %cst_26 = arith.constant 1.000000e+00 : f32
    %42 = vector.broadcast %cst_26 : f32 to vector<1x8xf32>
    %43 = arith.addf %42, %41 : vector<1x8xf32>
    %44 = arith.divf %42, %43 : vector<1x8xf32>
    %45 = arith.truncf %22 : vector<8x128xf32> to vector<8x128xbf16>
    %c0_27 = arith.constant 0 : index
    %c0_28 = arith.constant 0 : index
    %46 = vector.load %arg11[%c0_27, %c0_28] : memref<8x128xbf16, #tpu.memory_space<vmem>>, vector<8x128xbf16>
    tpu.vector_store %arg11[%c0_27, %c0_28], %45 {strides = array<i32>} : memref<8x128xbf16, #tpu.memory_space<vmem>>, vector<8x128xbf16>,
    %47 = vector.shape_cast %44 : vector<1x8xf32> to vector<1x1x8xf32>
    %c0_29 = arith.constant 0 : index
    %c0_30 = arith.constant 0 : index
    %c0_31 = arith.constant 0 : index
    %48 = vector.load %arg10[%c0_29, %c0_30, %c0_31] : memref<1x1x8xf32, #tpu.memory_space<vmem>>, vector<1x1x8xf32>
    tpu.vector_store %arg10[%c0_29, %c0_30, %c0_31], %47 {strides = array<i32>} : memref<1x1x8xf32, #tpu.memory_space<vmem>>, vector<1x1x8xf32>,
    return
  }
  func.func @transform_0(%arg0: i32) -> (i32, i32) {
    %c0_i32 = arith.constant 0 : i32
    %c0_i32_0 = arith.constant 0 : i32
    return %arg0, %c0_i32 : i32, i32
  }
  func.func @transform_1(%arg0: i32) -> (i32, i32) {
    %c0_i32 = arith.constant 0 : i32
    %c0_i32_0 = arith.constant 0 : i32
    %c0_i32_1 = arith.constant 0 : i32
    return %c0_i32, %c0_i32_0 : i32, i32
  }
  func.func @transform_2(%arg0: i32) -> (i32, i32) {
    %c0_i32 = arith.constant 0 : i32
    %c0_i32_0 = arith.constant 0 : i32
    %c0_i32_1 = arith.constant 0 : i32
    return %c0_i32, %c0_i32_0 : i32, i32
  }
  func.func @transform_3(%arg0: i32) -> (i32, i32) {
    %c0_i32 = arith.constant 0 : i32
    %c0_i32_0 = arith.constant 0 : i32
    %c0_i32_1 = arith.constant 0 : i32
    return %c0_i32, %c0_i32_0 : i32, i32
  }
  func.func @transform_4(%arg0: i32) -> (i32, i32) {
    %c0_i32 = arith.constant 0 : i32
    %c0_i32_0 = arith.constant 0 : i32
    %c0_i32_1 = arith.constant 0 : i32
    return %c0_i32, %c0_i32_0 : i32, i32
  }
  func.func @transform_5(%arg0: i32) -> (i32, i32) {
    %c0_i32 = arith.constant 0 : i32
    %c0_i32_0 = arith.constant 0 : i32
    %c0_i32_1 = arith.constant 0 : i32
    return %c0_i32, %c0_i32_0 : i32, i32
  }
  func.func @transform_6(%arg0: i32) -> (i32, i32) {
    %c0_i32 = arith.constant 0 : i32
    %c0_i32_0 = arith.constant 0 : i32
    %c0_i32_1 = arith.constant 0 : i32
    return %c0_i32, %c0_i32_0 : i32, i32
  }
  func.func @transform_7(%arg0: i32) -> (i32, i32) {
    %c0_i32 = arith.constant 0 : i32
    %c0_i32_0 = arith.constant 0 : i32
    %c0_i32_1 = arith.constant 0 : i32
    return %c0_i32, %c0_i32_0 : i32, i32
  }
  func.func @transform_8(%arg0: i32) -> (i32, i32) {
    %c0_i32 = arith.constant 0 : i32
    %c0_i32_0 = arith.constant 0 : i32
    %c0_i32_1 = arith.constant 0 : i32
    return %c0_i32, %c0_i32_0 : i32, i32
  }
  func.func @transform_9(%arg0: i32) -> (i32, i32, i32) {
    %c0_i32 = arith.constant 0 : i32
    %c0_i32_0 = arith.constant 0 : i32
    %c0_i32_1 = arith.constant 0 : i32
    return %arg0, %c0_i32, %c0_i32_0 : i32, i32, i32
  }
  func.func @transform_10(%arg0: i32) -> (i32, i32) {
    %c0_i32 = arith.constant 0 : i32
    %c0_i32_0 = arith.constant 0 : i32
    return %arg0, %c0_i32 : i32, i32
  }
}

</mosaic_0001>

<bundles_post_ra>
// kernel: discriminator_central.1
= control target key start
LH: loop header
LB: loop body
LE: loop exit
PB: predicated region body
PF: predicated region fallthrough
CT: control target
= control target key end

     0   :  { %v627_v1 = vmov 0   ;;  %vm75_vm0 = vcmask 261120   ;;  %v628_v23 = vmov 0.0   ;;  %v45_v29 = vlaneseq  ;;  %s801_s1 = inlined_call_operand.vmem [shape: bf16[32,256], index: 1, kind: input, shape index: {}]   ;;  %s802_s0 = inlined_call_operand.vmem [shape: f32[8,32], index: 0, kind: input, shape index: {}]   ;;  %s803_s3 = inlined_call_operand.vmem [shape: bf16[256,128], index: 3, kind: input, shape index: {}]   ;;  %s804_s5 = inlined_call_operand.vmem [shape: bf16[128,64], index: 5, kind: input, shape index: {}]   ;;  %s805_s2 = inlined_call_operand.vmem [shape: f32[1,256], index: 2, kind: input, shape index: {}]   ;;  %s806_s4 = inlined_call_operand.vmem [shape: f32[1,128], index: 4, kind: input, shape index: {}]   ;;  %s807_s10 = inlined_call_operand.vmem [shape: bf16[8,128], index: 10, kind: output, shape index: {1}]   ;;  %s808_s8 = inlined_call_operand.<no memory space> [shape: f32[1,1], index: 8, kind: input, shape index: {}]   ;;  %s809_s6 = inlined_call_operand.vmem [shape: f32[1,64], index: 6, kind: input, shape index: {}]   ;;  %s810_s7 = inlined_call_operand.vmem [shape: bf16[1,64], index: 7, kind: input, shape index: {}]   ;;  %s811_s9 = inlined_call_operand.vmem [shape: f32[1,1,8], index: 9, kind: output, shape index: {0}]  }
   0x1   :  { %v593_v0 = vld [vmem:[%s801_s1 + $0x14] ss:$8 sps:$4 sm:$0xff]   ;;  %111 = vmatprep.mubr.bf16.mxu0 %v627_v1  ;;  %592 = vset.pattern.permute.xlu0 %v627_v1  ;;  %v595_v2 = vld [vmem:[%s801_s1 + $0x10] ss:$8 sps:$4 sm:$0xff]   ;;  %v596_v3 = vld [vmem:[%s801_s1 + $0x4] ss:$8 sps:$4 sm:$0xff]   ;;  %v16_v61 = vstv %s808_s8 }
   0x2   :  { %91 = vmatprep.subr.bf16.mxu0 %v593_v0  ;;  %v598_v4 = vld [vmem:[%s801_s1] ss:$8 sps:$4 sm:$0xff]   ;;  %v599_v6 = vld [vmem:[%s803_s3 + $0x78] sm:$0xff]   ;;  %v601_v8 = vld [vmem:[%s803_s3 + $0x70] sm:$0xff]   ;;  %v763_v30 = vshrl.u32 %v45_v29, 7  ;;  %vm629_vm3 = vmmov 0  }
   0x3   :  { %v37_v5 = vld [vmem:[%s802_s0] sm:$0xff]  ;;  %92 = vmatpush1.bf16.msra.mxu0 %v595_v2  ;;  %v600_v7 = vld [vmem:[%s803_s3 + $0x38] sm:$0xff]   ;;  %530 = vmatprep.subr.bf16.mxu1 %v599_v6  ;;  %v602_v10 = vld [vmem:[%s803_s3 + $0x30] sm:$0xff]   ;;  %17 = vst [vmem:[#allocation2] sm:$0x1] %v16_v61  ;;  %vm433_vm6 = vcmask 523264  }
   0x4   :  { %93 = vmatprep.subr.bf16.mxu0 %v596_v3  ;;  %v38_v9 = vpack.c.bf16 %v37_v5, %v37_v5  ;;  %531 = vmatpush3.bf16.msra.mxu1 %v600_v7  ;;  %v603_v11 = vld [vmem:[%s803_s3 + $0x68] sm:$0xff]   ;;  %v605_v13 = vld [vmem:[%s803_s3 + $0x60] sm:$0xff]   ;;  %v607_v15 = vld [vmem:[%s803_s3 + $0x58] sm:$0xff]   ;;  %v47_v31 = vsub.s32 0, %v763_v30  ;;  %v51_v33 = vsub.s32 1, %v763_v30  ;;  %vm487_vm7 = vcmask 57344  }
   0x5   :  { %532 = vmatprep.subr.bf16.mxu1 %v601_v8  ;;  %v604_v12 = vld [vmem:[%s803_s3 + $0x28] sm:$0xff]   ;;  %v606_v14 = vld [vmem:[%s803_s3 + $0x20] sm:$0xff]   ;;  %v608_v16 = vld [vmem:[%s803_s3 + $0x18] sm:$0xff]  }
   0x6   :  { %v609_v17 = vld [vmem:[%s803_s3 + $0x50] sm:$0xff]   ;;  %v611_v19 = vld [vmem:[%s803_s3 + $0x48] sm:$0xff]   ;;  %v613_v21 = vld [vmem:[%s803_s3 + $0x40] sm:$0xff]  }
   0x7   :  { %94 = vmatpush1.bf16.msra.mxu0 %v598_v4  ;;  %v610_v18 = vld [vmem:[%s803_s3 + $0x10] sm:$0xff]   ;;  %v612_v20 = vld [vmem:[%s803_s3 + $0x8] sm:$0xff]   ;;  %v614_v22 = vld [vmem:[%s803_s3] sm:$0xff]  }
   0x8   :  { %533 = vmatpush3.bf16.msra.mxu1 %v602_v10  ;;  %563 = vmatprep.subr.bf16.mxu0 %v628_v23  ;;  %v615_v24 = vld [vmem:[%s804_s5 + $0x38] sm:$0xff]   ;;  %v616_v25 = vld [vmem:[%s804_s5 + $0x30] sm:$0xff]   ;;  %v617_v26 = vld [vmem:[%s804_s5 + $0x28] sm:$0xff]  }
   0x9   :  { %534 = vmatprep.subr.bf16.mxu1 %v603_v11  ;;  %v618_v27 = vld [vmem:[%s804_s5 + $0x20] sm:$0xff]   ;;  %v619_v28 = vld [vmem:[%s804_s5 + $0x18] sm:$0xff]   ;;  %v620_v48 = vld [vmem:[%s804_s5 + $0x10] sm:$0xff]  }
   0xa   :  { %501 = vmatmul.mubr.msk.bf16.vlgmr.msra.gmra.mxu0 %vm75_vm0, %v38_v9  ;;  %v43_v32 = vld [vmem:[%s805_s2] sm:$0x3]  ;;  %v621_v49 = vld [vmem:[%s804_s5 + $0x8] sm:$0xff]  }
   0xb   :  { %564 = vmatpush3.bf16.msra.mxu0 %v615_v24  ;;  %v48_v34 = vrot.slane %v43_v32, %v47_v31  ;;  %v52_v35 = vrot.slane %v43_v32, %v51_v33  ;;  %v622_v50 = vld [vmem:[%s804_s5] sm:$0xff]   ;;  %579 = vmatprep.mubr.msk.bf16.mxu0 %vm629_vm3, %v628_v23 }
   0xc   :  { %535 = vmatpush3.bf16.msra.mxu1 %v604_v12  ;;  %565 = vmatprep.subr.bf16.mxu0 %v628_v23  ;;  %v502_v52 = vld [vmem:[%s806_s4] ss:$0 sm:$0xff] }
   0xd   :  { %536 = vmatprep.subr.bf16.mxu1 %v605_v13  ;;  %v423_v62 = vld [vmem:[#allocation2] sm:$0x1] }
   0xe   :  { %426 = vperm.xlu0 %592, %v423_v62   ;;  %v519_v63 = vld [vmem:[%s809_s6] ss:$0 sm:$0xff] }
   0xf   :  { %566 = vmatpush3.bf16.msra.mxu0 %v616_v25  ;;  %v421_v9 = vld [vmem:[%s810_s7] sm:$0x1] }
  0x10   :  { %537 = vmatpush3.bf16.msra.mxu1 %v606_v14  ;;  %567 = vmatprep.subr.bf16.mxu0 %v628_v23 }
  0x11   :  { %538 = vmatprep.subr.bf16.mxu1 %v607_v15 }
  0x13   :  { %568 = vmatpush3.bf16.msra.mxu0 %v617_v26 }
  0x14   :  { %539 = vmatpush3.bf16.msra.mxu1 %v608_v16  ;;  %569 = vmatprep.subr.bf16.mxu0 %v628_v23 }
  0x15   :  { %540 = vmatprep.subr.bf16.mxu1 %v609_v17 }
  0x17   :  { %570 = vmatpush3.bf16.msra.mxu0 %v618_v27 }
  0x18   :  { %541 = vmatpush3.bf16.msra.mxu1 %v610_v18  ;;  %571 = vmatprep.subr.bf16.mxu0 %v628_v23 }
  0x19   :  { %542 = vmatprep.subr.bf16.mxu1 %v611_v19 }
  0x1b   :  { %572 = vmatpush3.bf16.msra.mxu0 %v619_v28 }
  0x1c   :  { %543 = vmatpush3.bf16.msra.mxu1 %v612_v20  ;;  %573 = vmatprep.subr.bf16.mxu0 %v628_v23 }
  0x1d   :  { %544 = vmatprep.subr.bf16.mxu1 %v613_v21 }
  0x1f   :  { %574 = vmatpush3.bf16.msra.mxu0 %v620_v48 }
  0x20   :  { %545 = vmatpush3.bf16.msra.mxu1 %v614_v22  ;;  %575 = vmatprep.subr.bf16.mxu0 %v628_v23 }
  0x21   :  { %583 = vmatprep.subr.bf16.mxu1 %v628_v23 }
  0x23   :  { %576 = vmatpush3.bf16.msra.mxu0 %v621_v49 }
  0x24   :  { %577 = vmatprep.subr.bf16.mxu0 %v628_v23 }
  0x27   :  { %578 = vmatpush3.bf16.msra.mxu0 %v622_v50 }
  0x89   :  { %v427_v10 = vpop.permute.xlu0 %426 }
  0x8a   :  { %v432_v11 = vrot.slane %v427_v10, %v47_v31 }
  0xca   :  { %v113_v36 = vpop.f32.mrf.mxu0 }
  0xcb   :  { %v114_v37 = vadd.f32 %v113_v36, %v48_v34 }
  0xcc   :  { %v115_v38 = vpop.f32.mrf.mxu0 }
  0xcd   :  { %vm120_vm1 = vcmp.gt.f32.partialorder %v114_v37, 0.0  ;;  %v122_v39 = vmul.f32 0.2, %v114_v37  ;;  %v116_v40 = vadd.f32 %v115_v38, %v52_v35 }
  0xce   :  { %v117_v41 = vpop.f32.mrf.mxu0 }
  0xcf   :  { %vm121_vm2 = vcmp.gt.f32.partialorder %v116_v40, 0.0  ;;  %v123_v42 = vmul.f32 0.2, %v116_v40  ;;  %v124_v44 = vsel %vm120_vm1, %v114_v37, %v122_v39 }
  0xd0   :  { %v118_v43 = vpop.f32.mrf.mxu0  ;;  %v126_v47 = vpack.c.bf16 %v124_v44, %v124_v44 }
  0xd1   :  { %v125_v45 = vsel %vm121_vm2, %v116_v40, %v123_v42 }
  0xd2   :  { %v127_v46 = vpack.c.bf16 %v125_v45, %v125_v45 }
  0xd4   :  { %295 = vmatprep.mubr.bf16.mxu1 %v127_v46 }
  0xd5   :  { %296 = vmatmul.mubr.bf16.vlgmr.msra.gmra.mxu1 %v126_v47 }
  0xd6   :  { %585 = vmatprep.mubr.msk.bf16.mxu1 %vm629_vm3, %v628_v23 }
 0x195   :  { %v546_v51 = vpop.f32.mrf.mxu1 }
 0x197   :  { %v547_v53 = vpop.f32.mrf.mxu1 }
 0x198   :  { %v548_v54 = vadd.f32 %v547_v53, %v546_v51 }
 0x199   :  { %v549_v55 = vpop.f32.mrf.mxu1 }
 0x19a   :  { %v298_v56 = vadd.f32 %v548_v54, %v502_v52 }
 0x19b   :  { %v550_v57 = vpop.f32.mrf.mxu1 }
 0x19c   :  { %vm303_vm4 = vcmp.gt.f32.partialorder %v298_v56, 0.0  ;;  %v304_v58 = vmul.f32 0.2, %v298_v56 }
 0x19e   :  { %v305_v59 = vsel %vm303_vm4, %v298_v56, %v304_v58 }
 0x19f   :  { %v306_v60 = vpack.c.bf16 %v305_v59, %v305_v59 }
 0x1a1   :  { %486 = vst [vmem:[%s807_s10] sm:$0xf] %v306_v60  ;;  %580 = vmatmul.mubr.bf16.vlgmr.msra.gmra.mxu0 %v306_v60 }
 0x261   :  { %v412_v0 = vpop.f32.mrf.mxu0 }
 0x262   :  { %v413_v1 = vadd.f32 %v519_v63, %v412_v0 }
 0x263   :  { %v581_v2 = vpop.f32.mrf.mxu0 }
 0x264   :  { %vm418_vm5 = vcmp.gt.f32.partialorder %v413_v1, 0.0  ;;  %v419_v3 = vmul.f32 0.2, %v413_v1 }
 0x265   :  { %v415_v4 = vpop.f32.mrf.mxu0 }
 0x266   :  { %v420_v5 = vsel %vm418_vm5, %v413_v1, %v419_v3 }
 0x267   :  { %v422_v6 = vpack.c.bf16 %v420_v5, %v420_v5  ;;  %v582_v7 = vpop.f32.mrf.mxu0 }
 0x269   :  { %v438_v8 = vsel %vm433_vm6, %v422_v6, 0 }
 0x26a   :  { %584 = vmatpush3.bf16.xpose.msra.mxu1 %v438_v8 }
 0x271   :  { %586 = vmatmul.mubr.msk.bf16.vlgmr.msra.gmra.mxu1 %vm433_vm6, %v421_v9 }
 0x331   :  { %v474_v12 = vpop.f32.mrf.mxu1 }
 0x332   :  { %v475_v13 = vadd.f32 %v474_v12, %v432_v11 }
 0x333   :  { %v587_v14 = vpop.f32.mrf.mxu1 }
 0x334   :  { %v529_v15 = vmul.f32 -1.442695, %v475_v13 }
 0x335   :  { %v477_v16 = vpop.f32.mrf.mxu1 }
 0x336   :  { %623 = vpow2.f32 %v529_v15 }
 0x337   :  { %v588_v17 = vpop.f32.mrf.mxu1 }
 0x343   :  { %v624_v18 = vpop.eup %623 }
 0x344   :  { %v483_v19 = vadd.f32 1.0, %v624_v18 }
 0x346   :  { %625 = vrcp.f32 %v483_v19 }
 0x353   :  { %v626_v20 = vpop.eup %625 }
 0x354   :  { %488 = vst.msk [vmem:[%s811_s9] sm:$0x1] %vm487_vm7, %v626_v20 }

</bundles_post_ra>
